<compile_context>
chip_gen: v7x
topology: tpu7x:2x2x1
jax: 0.10.0
libtpu: 0.0.40
codegen_flags: <defaults>
</compile_context>

<pallas_src>
import functools

import jax
import jax.numpy as jnp
from jax.experimental import pallas as pl
from jax.experimental.pallas import tpu as pltpu


def _gfft_kernel(x_ref, b_ref, o_ref):
    # x_ref: (TN, C) f32, b_ref: (C, M) f32, o_ref: (TN, M) out dtype
    xb = jnp.dot(
        x_ref[...],
        b_ref[...],
        preferred_element_type=jnp.float32,
        precision=jax.lax.Precision.HIGHEST,
    )
    # sin evaluated in f32, single cast on store.
    o_ref[...] = jnp.sin(xb).astype(o_ref.dtype)


@functools.partial(jax.jit, static_argnames=("tile_n",))
def gaussian_fourier_feature_transform(x, B, *, tile_n=4096):
    """x: (1, N, C) or (N, C); B: (C, M). Returns sin(x @ B) with shape (N, M)."""
    if x.ndim == 3:
        # match `x.squeeze(0)` + 2-D assert of the PyTorch module
        x = jnp.squeeze(x, axis=0)
    assert x.ndim == 2, f"Expected 2D input (got {x.ndim}D input)"
    N, C = x.shape
    Cb, M = B.shape
    assert C == Cb

    out_dtype = x.dtype
    x_f32 = x.astype(jnp.float32)
    B_f32 = B.astype(jnp.float32)

    # Row tile: if everything fits in one tile, use the full row extent
    # (block dim == array dim is always legal, no multiple-of-8 requirement).
    # Otherwise use a multiple-of-8 tile; the final partial block's writes are
    # masked by Pallas, so no explicit N padding / slicing is needed.
    tile_n = max(8, (int(tile_n) // 8) * 8)
    tile = N if N <= tile_n else tile_n
    grid = (pl.cdiv(N, tile),)

    return pl.pallas_call(
        _gfft_kernel,
        out_shape=jax.ShapeDtypeStruct((N, M), out_dtype),
        grid_spec=pltpu.PrefetchScalarGridSpec(
            num_scalar_prefetch=0,
            grid=grid,
            in_specs=[
                pl.BlockSpec((tile, C), lambda i: (i, 0)),   # x row tile (pipelined)
                pl.BlockSpec((C, M), lambda i: (0, 0)),      # full B, resident in VMEM
            ],
            out_specs=pl.BlockSpec((tile, M), lambda i: (i, 0)),  # true M, no padding
        ),
        compiler_params=pltpu.CompilerParams(
            dimension_semantics=("parallel",),
        ),
    )(x_f32, B_f32)


if __name__ == "__main__":
    # Module defaults: num_input_channels=4, mapping_size=93, scale=25
    num_input_channels = 4
    mapping_size = 93
    scale = 25.0

    key = jax.random.PRNGKey(0)
    k_b, k_x1, k_x2 = jax.random.split(key, 3)

    # B = randn(C, mapping_size) * scale  (deterministic synthetic parameter)
    B = jax.random.normal(
        k_b, (num_input_channels, mapping_size), dtype=jnp.float32
    ) * scale

    def reference(x2d):
        # Same (highest) matmul precision as the kernel so the comparison is
        # not dominated by default-precision MXU rounding of O(100) arguments.
        return jnp.sin(jnp.dot(x2d, B, precision=jax.lax.Precision.HIGHEST))

    # --- case 1: module-shaped input (1, N, C), single-block grid -------------
    N1 = 8
    x1 = jax.random.normal(k_x1, (1, N1, num_input_channels), dtype=jnp.float32)
    out1 = jax.block_until_ready(gaussian_fourier_feature_transform(x1, B))
    ref1 = reference(jnp.squeeze(x1, axis=0))
    assert out1.shape == (N1, mapping_size)
    assert jnp.allclose(out1, ref1, atol=5e-3, rtol=5e-3), "mismatch vs reference (case 1)"

    # --- case 2: multi-step grid + partial final block (N not a tile multiple) -
    N2 = 200
    x2 = jax.random.normal(k_x2, (N2, num_input_channels), dtype=jnp.float32)
    out2 = jax.block_until_ready(
        gaussian_fourier_feature_transform(x2, B, tile_n=64)
    )
    ref2 = reference(x2)
    assert out2.shape == (N2, mapping_size)
    assert jnp.allclose(out2, ref2, atol=5e-3, rtol=5e-3), "mismatch vs reference (case 2)"

    print("KERNEL_OK")
</pallas_src>

<mosaic_0001>
module attributes {stable_mosaic.version = 11 : i64} {
  func.func @_gfft_kernel(%arg0: i32, %arg1: memref<8x4xf32, #tpu.memory_space<vmem>>, %arg2: memref<4x93xf32, #tpu.memory_space<vmem>>, %arg3: memref<8x93xf32, #tpu.memory_space<vmem>>) attributes {dimension_semantics = [#tpu.dimension_semantics<parallel>], iteration_bounds = array<i64: 1>, scalar_prefetch = 0 : i64, scratch_operands = 0 : i64, tpu.core_type = #tpu.core_type<tc>, window_params = [{transform_indices = @transform_0, window_bounds = array<i64: 8, 4>}, {pipeline_mode = #tpu.pipeline_mode<synchronous>, transform_indices = @transform_1, window_bounds = array<i64: 4, 93>}, {transform_indices = @transform_2, window_bounds = array<i64: 8, 93>}]} {
    %c0 = arith.constant 0 : index
    %c0_0 = arith.constant 0 : index
    %0 = vector.load %arg1[%c0, %c0_0] : memref<8x4xf32, #tpu.memory_space<vmem>>, vector<8x4xf32>
    %c0_1 = arith.constant 0 : index
    %c0_2 = arith.constant 0 : index
    %1 = vector.load %arg2[%c0_1, %c0_2] : memref<4x93xf32, #tpu.memory_space<vmem>>, vector<4x93xf32>
    %cst = arith.constant dense<0.000000e+00> : vector<8x93xf32>
    %2 = tpu.matmul %0, %1, %cst {dimension_numbers = #tpu.dot_dimension_numbers<[1], [0], [0], [1], [0, 0, 1, 1], [], []>, precision = #tpu.contract_precision<fp32>} : vector<8x4xf32>, vector<4x93xf32>, vector<8x93xf32> -> vector<8x93xf32>
    %3 = math.sin %2 : vector<8x93xf32>
    %c0_3 = arith.constant 0 : index
    %c0_4 = arith.constant 0 : index
    %4 = vector.load %arg3[%c0_3, %c0_4] : memref<8x93xf32, #tpu.memory_space<vmem>>, vector<8x93xf32>
    tpu.vector_store %arg3[%c0_3, %c0_4], %3 {strides = array<i32>} : memref<8x93xf32, #tpu.memory_space<vmem>>, vector<8x93xf32>,
    return
  }
  func.func @transform_0(%arg0: i32) -> (i32, i32) {
    %c0_i32 = arith.constant 0 : i32
    %c0_i32_0 = arith.constant 0 : i32
    return %arg0, %c0_i32 : i32, i32
  }
  func.func @transform_1(%arg0: i32) -> (i32, i32) {
    %c0_i32 = arith.constant 0 : i32
    %c0_i32_0 = arith.constant 0 : i32
    %c0_i32_1 = arith.constant 0 : i32
    return %c0_i32, %c0_i32_0 : i32, i32
  }
  func.func @transform_2(%arg0: i32) -> (i32, i32) {
    %c0_i32 = arith.constant 0 : i32
    %c0_i32_0 = arith.constant 0 : i32
    return %arg0, %c0_i32 : i32, i32
  }
}

</mosaic_0001>

<bundles_post_ra>
// kernel: gaussian_fourier_feature_transform.1
= control target key start
LH: loop header
LB: loop body
LE: loop exit
PB: predicated region body
PF: predicated region fallthrough
CT: control target
= control target key end

     0   :  { %vm18_vm0 = vcmask 1043456   ;;  %v684_v2 = vmov 0.0   ;;  %vm685_vm1 = vmmov 0   ;;  %vm14_vm2 = vcmask 31744   ;;  %s753_s0 = inlined_call_operand.vmem [shape: f32[8,4], index: 0, kind: input, shape index: {}]   ;;  %s754_s1 = inlined_call_operand.vmem [shape: f32[4,93], index: 1, kind: input, shape index: {}]   ;;  %s755_s2 = inlined_call_operand.hbm [shape: f32[8,93], index: 2, kind: output, shape index: {}]  }
   0x1   :  { %v13_v0 = vld [vmem:[%s754_s1] sm:$0xf]  ;;  %619 = vmatprep.subr.mxu0 %v684_v2  ;;  %621 = vmatprep.mubr.msk.f32.mxu0 %vm685_vm1, %v684_v2 }
   0x2   :  { %v12_v1 = vld [vmem:[%s753_s0] sm:$0xff]  ;;  %v20_v3 = vsel %vm18_vm0, %v13_v0, 0 }
   0x3   :  { %7 = vsyncpa [#allocation3], 0  ;;  %v23_v4 = vand.u32 4294901760, %v20_v3  ;;  %v16_v5 = vsel %vm14_vm2, %v12_v1, 0  ;;  %604 = vmatprep.subr.mxu1 %v684_v2  ;;  %606 = vmatprep.mubr.msk.f32.mxu1 %vm685_vm1, %v684_v2  ;;  %v686_v30 = vmov 683565275  }
   0x4   :  { %v88_v6 = vand.u32 4294901760, %v16_v5  ;;  %v687_v32 = vmov 2475754826   ;;  %v688_v35 = vmov 2131351028   ;;  %s692_s0 = smov [#allocation2]  }
   0x5   :  { %v100_v7 = vsub.f32 %v20_v3, %v23_v4  ;;  %620 = vmatpush3.msra.mxu0 %v23_v4  ;;  %605 = vmatpush3.msra.mxu1 %v23_v4  ;;  %v689_v38 = vmov 2102212464   ;;  %v690_v41 = vmov 920167782   ;;  %v691_v44 = vmov 1326507024  }
   0x6   :  { %v89_v8 = vsub.f32 %v16_v5, %v88_v6  ;;  %609 = vmatprep.subr.mxu1 %v684_v2  ;;  %624 = vmatprep.subr.mxu0 %v684_v2  ;;  %s580_s1 = sshll.u32 %s692_s0, 4  ;;  %vm572_vm15 = vcmask 760832   ;;  %s581_s1 = int_to_ptr.vmem [resolvable:$true] %s580_s1 }
   0x7   :  { %v101_v9 = vand.u32 4294901760, %v100_v7  ;;  %s660_s13 = scalar_lea.vmem %s581_s1, 128  ;;  %p665_p1 = scmp.lt.s32.totalorder %s581_s1, %s581_s1 }
   0x8   :  { %v90_v10 = vand.u32 4294901760, %v89_v8  ;;  %p661_p0 = scmp.ne.s32.totalorder %s581_s1, %s660_s13  ;;  %p666_p2 = scmp.lt.s32.totalorder %s660_s13, %s660_s13 }
   0x9   :  { %v102_v11 = vsub.f32 %v100_v7, %v101_v9 }
   0xa   :  { %622 = vmatmul.mubr.f32.vlgmr.msra.gmra.mrb[0].mxu0 %v90_v10  ;;  %v91_v12 = vsub.f32 %v89_v8, %v90_v10  ;;  %p667_p3 = por %p666_p2, %p665_p1 }
   0xb   :  { %v103_v13 = vand.u32 4294901760, %v102_v11  ;;  %625 = vmatpush3.msra.mxu0 %v101_v9  ;;  %626 = vmatprep.mubr.msk.f32.mxu0 %vm685_vm1, %v684_v2 }
   0xc   :  { %v92_v14 = vand.u32 4294901760, %v91_v12  ;;  %629 = vmatprep.subr.mxu0 %v684_v2  ;;  %p668_p4 = pnand %p667_p3, %p661_p0 }
   0xe   :  { %607 = vmatmul.mubr.f32.vlgmr.msra.gmra.mrb[0].mxu1 %v92_v14 }
   0xf   :  { %610 = vmatpush3.msra.mxu1 %v103_v13  ;;  %611 = vmatprep.mubr.msk.f32.mxu1 %vm685_vm1, %v684_v2 }
  0x10   :  { %614 = vmatprep.subr.mxu1 %v684_v2 }
  0x12   :  { %627 = vmatmul.mubr.f32.vlgmr.msra.gmra.mrb[0].mxu0 %v88_v6 }
  0x13   :  { %630 = vmatpush3.msra.mxu0 %v23_v4  ;;  %631 = vmatprep.mubr.msk.f32.mxu0 %vm685_vm1, %v684_v2 }
  0x16   :  { %612 = vmatmul.mubr.f32.vlgmr.msra.gmra.mrb[0].mxu1 %v88_v6 }
  0x17   :  { %615 = vmatpush3.msra.mxu1 %v100_v7  ;;  %616 = vmatprep.mubr.msk.f32.mxu1 %vm685_vm1, %v684_v2 }
  0x1a   :  { %632 = vmatmul.mubr.f32.vlgmr.msra.gmra.mrb[0].mxu0 %v88_v6 }
  0x1e   :  { %617 = vmatmul.mubr.f32.vlgmr.msra.gmra.mrb[0].mxu1 %v89_v8 }
  0xed   :  { %v464_v15 = vpop.f32.mrb[0].mxu0 }
  0xee   :  { %v633_v16 = vpop.f32.mrb[1].mxu0 }
  0xf1   :  { %v244_v17 = vpop.f32.mrb[0].mxu1 }
  0xf2   :  { %v720_v18 = vadd.f32 %v464_v15, %v244_v17  ;;  %v618_v19 = vpop.f32.mrb[1].mxu1 }
  0xf4   :  { %v471_v20 = vand.u32 2139095040, %v720_v18  ;;  %v468_v24 = vand.u32 2147483647, %v720_v18  ;;  %vm470_vm10 = vcmp.lt.s32.totalorder %v720_v18, 0  ;;  %vm560_vm0 = vweird.f32 %v720_v18 }
  0xf6   :  { %v472_v21 = vshrl.u32 %v471_v20, 23  ;;  %v475_v27 = vand.u32 8388607, %v468_v24  ;;  %vm469_vm11 = vcmp.le.f32.partialorder %v468_v24, 0.7853982 }
  0xf8   :  { %v588_v22 = vadd.s32 4294967169, %v472_v21  ;;  %v476_v46 = vor.u32 8388608, %v475_v27 }
  0xfa   :  { %v478_v23 = vadd.s32 1, %v588_v22  ;;  %v516_v60 = vshll.u32 %v476_v46, 8 }
  0xfc   :  { %vm479_vm3 = vcmp.gt.s32.totalorder %v478_v23, 0 }
  0xfd   :  { %v480_v25 = vsel %vm479_vm3, %v478_v23, 0 }
  0xfe   :  { %v482_v26 = vand.u32 31, %v480_v25  ;;  %v481_v29 = vshrl.u32 %v480_v25, 5 }
 0x100   :  { %v483_v28 = vsub.s32 32, %v482_v26  ;;  %v485_v31 = vshll.u32 %v686_v30, %v482_v26  ;;  %v488_v33 = vshll.u32 %v687_v32, %v482_v26  ;;  %v491_v37 = vshll.u32 %v688_v35, %v482_v26 }
 0x101   :  { %v494_v40 = vshll.u32 %v689_v38, %v482_v26  ;;  %v497_v43 = vshll.u32 %v690_v41, %v482_v26  ;;  %vm500_vm4 = vcmp.lt.s32.totalorder %v481_v29, 1  ;;  %vm503_vm5 = vcmp.lt.s32.totalorder %v481_v29, 4 }
 0x102   :  { %v486_v34 = vshrl.u32 %v687_v32, %v483_v28  ;;  %v489_v36 = vshrl.u32 %v688_v35, %v483_v28  ;;  %v492_v39 = vshrl.u32 %v689_v38, %v483_v28  ;;  %v495_v42 = vshrl.u32 %v690_v41, %v483_v28 }
 0x103   :  { %v498_v45 = vshrl.u32 %v691_v44, %v483_v28  ;;  %v484_v55 = vshrl.u32 %v686_v30, %v483_v28  ;;  %vm502_vm6 = vcmp.lt.s32.totalorder %v481_v29, 3  ;;  %vm501_vm7 = vcmp.lt.s32.totalorder %v481_v29, 2 }
 0x104   :  { %v487_v47 = vor.u32 %v486_v34, %v485_v31  ;;  %v490_v48 = vor.u32 %v489_v36, %v488_v33  ;;  %v493_v49 = vor.u32 %v492_v39, %v491_v37  ;;  %v496_v50 = vor.u32 %v495_v42, %v494_v40 }
 0x105   :  { %v499_v51 = vor.u32 %v498_v45, %v497_v43 }
 0x106   :  { %v505_v52 = vsel %vm503_vm5, %v493_v49, 2102212464  ;;  %v508_v53 = vsel %vm500_vm4, %v487_v47, %v490_v48  ;;  %v512_v54 = vsel %vm500_vm4, %v490_v48, %v493_v49  ;;  %v509_v56 = vsel %vm503_vm5, %v496_v50, 920167782 }
 0x107   :  { %v513_v57 = vsel %vm503_vm5, %v499_v51, 1326507024  ;;  %v510_v58 = vsel %vm502_vm6, %v493_v49, %v509_v56  ;;  %v504_v61 = vsel %vm500_vm4, %v484_v55, %v487_v47  ;;  %v506_v62 = vsel %vm502_vm6, %v490_v48, %v505_v52 }
 0x108   :  { %v514_v59 = vsel %vm502_vm6, %v496_v50, %v513_v57  ;;  %v511_v63 = vsel %vm501_vm7, %v508_v53, %v510_v58  ;;  %v507_v5 = vsel %vm501_vm7, %v504_v61, %v506_v62 }
 0x109   :  { %v515_v0 = vsel %vm501_vm7, %v512_v54, %v514_v59  ;;  %v729_v3 = vmul.u32.u64.low %v516_v60, %v511_v63  ;;  %v730_v4 = vmul.u32.u64.high %v516_v60, %v511_v63, %v729_v3  ;;  %v523_v7 = vmul.u32 %v516_v60, %v507_v5 }
 0x10a   :  { %v726_v1 = vmul.u32.u64.low %v516_v60, %v515_v0  ;;  %v727_v2 = vmul.u32.u64.high %v516_v60, %v515_v0, %v726_v1 }
 0x10b   :  { %v526_v6 = vadd.s32 1, %v730_v4 }
 0x10c   :  { %vm525_vm8 = vc.u32 %v727_v2, %v729_v3  ;;  %v524_v20 = vadd.s32 %v729_v3, %v727_v2 }
 0x10d   :  { %v527_v8 = vsel %vm525_vm8, %v526_v6, %v730_v4 }
 0x10e   :  { %v528_v9 = vadd.s32 %v527_v8, %v523_v7 }
 0x110   :  { %v529_v10 = vadd.s32 536870912, %v528_v9 }
 0x112   :  { %v530_v11 = vshrl.u32 %v529_v10, 30 }
 0x114   :  { %v531_v12 = vshll.u32 %v530_v11, 30  ;;  %v554_v33 = vsub.s32 4, %v530_v11 }
 0x116   :  { %v532_v13 = vsub.s32 %v528_v9, %v531_v12  ;;  %v555_v36 = vsel %vm470_vm10, %v554_v33, %v530_v11 }
 0x117   :  { %v557_v38 = vsel %vm469_vm11, 0, %v555_v36 }
 0x118   :  { %v534_v14 = vsub.s32 0, %v532_v13  ;;  %v561_v39 = vadd.s32 3, %v557_v38 }
 0x11a   :  { %v589_v15 = vmin.u32 %v534_v14, %v532_v13  ;;  %v562_v40 = vand.u32 3, %v561_v39 }
 0x11c   :  { %v536_v16 = vclz %v589_v15  ;;  %vm567_vm12 = vcmp.eq.s32.totalorder %v562_v40, 2  ;;  %vm564_vm13 = vcmp.eq.s32.totalorder %v562_v40, 0  ;;  %vm563_vm14 = vcmp.lt.s32.totalorder %v562_v40, 2 }
 0x11e   :  { %v590_v17 = vadd.s32 4294967294, %v536_v16 }
 0x120   :  { %vm591_vm9 = vcmp.lt.s32.totalorder %v590_v17, 0 }
 0x121   :  { %v539_v19 = vsel %vm591_vm9, 0, %v590_v17 }
 0x122   :  { %v540_v21 = vsub.s32 32, %v539_v19  ;;  %v544_v22 = vsub.s32 4294967266, %v539_v19  ;;  %v541_v23 = vshll.u32 %v532_v13, %v539_v19 }
 0x124   :  { %v542_v25 = vshrl.u32 %v524_v20, %v540_v21  ;;  %v545_v26 = vadd.s32 127, %v544_v22 }
 0x126   :  { %v543_v27 = vor.u32 %v542_v25, %v541_v23  ;;  %v546_v28 = vshll.u32 %v545_v26, 23 }
 0x128   :  { %v547_v29 = vor.u32 4788187, %v546_v28  ;;  %v550_v31 = vcvt.s32.f32 %v543_v27 }
 0x12a   :  { %v548_v30 = vand.u32 2147483647, %v547_v29 }
 0x12c   :  { %v551_v32 = vmul.f32 %v550_v31, %v548_v30 }
 0x12e   :  { %v552_v34 = vxor.u32 2147483648, %v551_v32 }
 0x130   :  { %v553_v35 = vsel %vm470_vm10, %v552_v34, %v551_v32 }
 0x131   :  { %v556_v37 = vsel %vm469_vm11, %v720_v18, %v553_v35 }
 0x132   :  { %656 = vcosq.f32 %v556_v37 }
 0x133   :  { %658 = vsinq.f32 %v556_v37 }
 0x13c   :  { %v657_v41 = vpop.eup %656 }
 0x13d   :  { %v659_v42 = vpop.eup %658  ;;  %v568_v43 = vxor.u32 2147483648, %v657_v41 }
 0x13e   :  { %v565_v44 = vxor.u32 2147483648, %v659_v42 }
 0x13f   :  { %v569_v45 = vsel %vm567_vm12, %v568_v43, %v659_v42 }
 0x140   :  { %v566_v46 = vsel %vm564_vm13, %v657_v41, %v565_v44 }
 0x141   :  { %v570_v24 = vsel %vm563_vm14, %v566_v46, %v569_v45 }
 0x142   :  { %v571_v47 = vsel %vm560_vm0, nan, %v570_v24 }
 0x143   :  { %573 = vst.msk [vmem:[#allocation2] sm:$0xff] %vm572_vm15, %v571_v47 }
 0x144   :  { %671 = shalt.err (!%p668_p4)
}
 0x145   :  { %s672_s16 = scalar_lea.hbm %s755_s2, 128 }
 0x146   :  { %p673_p5 = scmp.ne.s32.totalorder %s755_s2, %s672_s16  ;;  %p676_p6 = scmp.lt.u32.totalorder %s672_s16, %s755_s2 }
 0x148   :  { %p678_p7 = pnand %p676_p6, %p673_p5 }
 0x14a   :  { %681 = shalt.err (!%p678_p7)
}
 0x14b   :  { %583 = dma.vmem_to_hbm [thread:$0]  %s581_s1, 128, %s755_s2, [#allocation3]  }
 0x14c   :  { %682 = dma.done.wait [#allocation3], 128  }
 0x14d   :  { %683 = vsyncadd [#allocation3], 4294967168 }
 0x14e   :  { %587 = vsyncpa [#allocation3], 1 }

</bundles_post_ra>
